<compile_context>
chip_gen: v6e
topology: v6e:2x2x1
jax: 0.10.0
libtpu: 0.0.40
codegen_flags: <defaults>
</compile_context>

<pallas_src>
import math
import functools

import jax
import jax.numpy as jnp
from jax.experimental import pallas as pl
from jax.experimental.pallas import tpu as pltpu


# ------------------------------ fused kernel -------------------------------- #

def fused_encoder_kernel(x_ref, wqk_ref, fc_ref, ln1_g_ref, ln1_b_ref,
                         ff1_ref, ff2_ref, ln2_g_ref, ln2_b_ref, o_ref,
                         *, n_heads, head_dim, batch, seq):
    """One grid step == one EncoderBlock applied to one batch tile.

    o_ref (same block index for every layer of a batch tile) carries the (Mt, E)
    activation in VMEM across the whole layer axis."""
    l = pl.program_id(1)                                     # layer axis (inner / arbitrary)
    emb = n_heads * head_dim

    # First layer of this batch tile: load the (PE-added) input into the resident block.
    @pl.when(l == 0)
    def _():
        o_ref[...] = x_ref[...]

    x = o_ref[...]                                           # (Mt, E) float32
    x_bf = x.astype(jnp.bfloat16)
    scale = 1.0 / math.sqrt(head_dim)

    # --- fused Q|K projection: one wide MXU matmul (N = 2E) --------------------------------
    qk = jnp.dot(x_bf, wqk_ref[...], preferred_element_type=jnp.float32)   # (Mt, 2E) f32

    # --- multi-head self attention -----------------------------------------------------
    # (V = W_K(x) and the pad mask is never applied: reference bugs preserved.)
    # H is tiny here so a static unroll is fine; for large H switch to
    # lax.fori_loop(..., unroll=True) to bound vreg live ranges.
    ctx_heads = []
    for h in range(n_heads):
        qh = qk[:, h * head_dim:(h + 1) * head_dim].reshape(batch, seq, head_dim)
        kh = qk[:, emb + h * head_dim:emb + (h + 1) * head_dim].reshape(batch, seq, head_dim)
        s = jnp.einsum('bqd,bkd->bqk', qh, kh,
                       preferred_element_type=jnp.float32) * scale          # (b, S, S)
        s = s - jnp.max(s, axis=-1, keepdims=True)
        e = jnp.exp(s)
        p = e * pl.reciprocal(jnp.sum(e, axis=-1, keepdims=True), approx=True)
        ctx_heads.append(
            jnp.einsum('bqk,bkd->bqd',
                       p.astype(jnp.bfloat16),
                       kh.astype(jnp.bfloat16),               # V == K (reference bug)
                       preferred_element_type=jnp.float32))                 # (b, S, dh)

    # concat over heads then ONE wide fc matmul (K = E), instead of H K=dh accumulations.
    ctx = jnp.concatenate(ctx_heads, axis=-1).reshape(batch * seq, emb)     # (Mt, E) f32
    att = jnp.dot(ctx.astype(jnp.bfloat16), fc_ref[...],
                  preferred_element_type=jnp.float32)                        # (Mt, E) f32

    # --- residual + LayerNorm 1 (f32) ---
    h1 = x + att
    mu = jnp.mean(h1, axis=-1, keepdims=True)
    var = jnp.mean(jnp.square(h1 - mu), axis=-1, keepdims=True)
    h1 = (h1 - mu) * jax.lax.rsqrt(var + 1e-5) * ln1_g_ref[...] + ln1_b_ref[...]

    # --- feed forward: Linear -> ReLU -> Linear ---
    ff = jnp.maximum(
        jnp.dot(h1.astype(jnp.bfloat16), ff1_ref[...],
                preferred_element_type=jnp.float32), 0.0)
    ff = jnp.dot(ff.astype(jnp.bfloat16), ff2_ref[...],
                 preferred_element_type=jnp.float32)

    # --- residual + LayerNorm 2 (f32) ---
    h2 = h1 + ff
    mu2 = jnp.mean(h2, axis=-1, keepdims=True)
    var2 = jnp.mean(jnp.square(h2 - mu2), axis=-1, keepdims=True)
    o_ref[...] = (h2 - mu2) * jax.lax.rsqrt(var2 + 1e-5) * ln2_g_ref[...] + ln2_b_ref[...]
    # TODO(synk): E=64 (<128 lanes) means VMEM stores here are masked vst.msk; left as-is
    # since E is fixed by the module and the HBM writeback happens once per batch tile.


# --------------------------------- wrapper ----------------------------------- #

def transformer_encoder_forward(x, pe, blocks, datas_len, n_heads, batch_tiles=1):
    B, S, E = x.shape
    L = len(blocks)
    H = n_heads
    dh = E // H
    FF = blocks[0]['ff1'].shape[1]

    assert B % batch_tiles == 0, "batch_tiles must divide B"
    Bt = B // batch_tiles                 # batch examples per tile
    Mt = Bt * S                           # activation rows per tile
    assert Mt % 8 == 0 or batch_tiles == 1, "activation tile must be sublane aligned"

    # ---- one-time XLA-side weight packing ----
    # Fused [Wq | Wk] slab -> single wide (E, 2E) projection matmul in-kernel.
    wqk = jnp.stack([jnp.concatenate([p['wq'], p['wk']], axis=1) for p in blocks]
                    ).astype(jnp.bfloat16)                                    # (L, E, 2E)
    fc = jnp.stack([p['fc'] for p in blocks]).astype(jnp.bfloat16)            # (L, E, E)
    ff1 = jnp.stack([p['ff1'] for p in blocks]).astype(jnp.bfloat16)          # (L, E, FF)
    ff2 = jnp.stack([p['ff2'] for p in blocks]).astype(jnp.bfloat16)          # (L, FF, E)
    ln1_g = jnp.stack([p['ln1_g'] for p in blocks])                           # (L, 1, E) f32
    ln1_b = jnp.stack([p['ln1_b'] for p in blocks])
    ln2_g = jnp.stack([p['ln2_g'] for p in blocks])
    ln2_b = jnp.stack([p['ln2_b'] for p in blocks])

    # Position-encoding add in XLA (fuses for free, eval dropout = identity).
    x_flat = (x + pe[:S][None]).reshape(B * S, E)

    # get_attn_pad_mask never affects the reference output -> not built.
    del datas_len

    kernel = functools.partial(fused_encoder_kernel,
                               n_heads=H, head_dim=dh, batch=Bt, seq=S)

    act = lambda b, l: (b, 0)          # activation: one block per batch tile, resident over L
    w3 = lambda b, l: (l, 0, 0)        # per-layer weights

    # Advisory cost estimate (helps XLA schedule the wrapper-side packing around the call).
    M = B * S
    flops = int(L * (2 * M * E * (2 * E)          # fused Q|K projection
                     + 2 * 2 * B * H * S * S * dh  # scores + context
                     + 2 * M * E * E               # fc
                     + 2 * 2 * M * E * FF))        # feed-forward
    transcendentals = int(L * B * H * S * S)       # softmax exp
    bytes_accessed = int(batch_tiles * L * (2 * (E * 2 * E + E * E + 2 * E * FF)
                                            + 4 * 4 * E)
                         + 2 * 4 * M * E)

    # Explicit VMEM budget: double-buffered bf16 per-layer weights + resident activation
    # + in-flight f32 intermediates, with headroom.  Clamped to stay sane across
    # v5e (16 MiB default scoped) .. v7x (64 MiB physical).
    weight_buf = 2 * 2 * (E * 2 * E + E * E + 2 * E * FF) + 2 * 4 * 4 * E
    act_buf = 4 * Mt * (6 * E + 2 * FF)
    vmem_limit = int(min(64 << 20, max(16 << 20, 2 * (weight_buf + act_buf))))

    out = pl.pallas_call(
        kernel,
        out_shape=jax.ShapeDtypeStruct((B * S, E), jnp.float32),
        grid_spec=pltpu.PrefetchScalarGridSpec(
            num_scalar_prefetch=0,
            grid=(batch_tiles, L),                        # (parallel batch, sequential layers)
            in_specs=[
                pl.BlockSpec((Mt, E), act),               # x (+PE), per batch tile
                pl.BlockSpec((None, E, 2 * E), w3),       # fused [Wq|Wk]
                pl.BlockSpec((None, E, E), w3),           # fc
                pl.BlockSpec((None, 1, E), w3),           # ln1 gamma
                pl.BlockSpec((None, 1, E), w3),           # ln1 beta
                pl.BlockSpec((None, E, FF), w3),          # ff1
                pl.BlockSpec((None, FF, E), w3),          # ff2
                pl.BlockSpec((None, 1, E), w3),           # ln2 gamma
                pl.BlockSpec((None, 1, E), w3),           # ln2 beta
            ],
            out_specs=pl.BlockSpec((Mt, E), act),         # resident activation per batch tile
        ),
        compiler_params=pltpu.CompilerParams(
            dimension_semantics=("parallel", "arbitrary"),
            vmem_limit_bytes=vmem_limit),
        cost_estimate=pl.CostEstimate(flops=flops,
                                      transcendentals=transcendentals,
                                      bytes_accessed=bytes_accessed),
    )(x_flat, wqk, fc, ln1_g, ln1_b, ff1, ff2, ln2_g, ln2_b)
    return out.reshape(B, S, E)


# ---------------------------- pure-JAX reference ----------------------------- #

def _bf16_round(w):
    return w.astype(jnp.bfloat16).astype(jnp.float32)


def _layernorm(h, g, b):
    mu = jnp.mean(h, axis=-1, keepdims=True)
    var = jnp.mean(jnp.square(h - mu), axis=-1, keepdims=True)
    return (h - mu) / jnp.sqrt(var + 1e-5) * g + b


def _ref_block(x, p, n_heads):
    B, S, E = x.shape
    dh = E // n_heads
    wq, wk, fc = _bf16_round(p['wq']), _bf16_round(p['wk']), _bf16_round(p['fc'])
    ff1, ff2 = _bf16_round(p['ff1']), _bf16_round(p['ff2'])
    Q = (x @ wq).reshape(B, S, n_heads, dh).transpose(0, 2, 1, 3)
    K = (x @ wk).reshape(B, S, n_heads, dh).transpose(0, 2, 1, 3)
    V = K                                                        # reference bug: V = W_K(x)
    scores = (Q @ K.transpose(0, 1, 3, 2)) / math.sqrt(E / n_heads)
    attn = jax.nn.softmax(scores, axis=-1)
    ctx = (attn @ V).transpose(0, 2, 1, 3).reshape(B, S, E)
    h1 = _layernorm(x + ctx @ fc, p['ln1_g'], p['ln1_b'])
    ff = jnp.maximum(h1 @ ff1, 0.0) @ ff2
    return _layernorm(h1 + ff, p['ln2_g'], p['ln2_b'])


# ----------------------------------- main ------------------------------------ #

def make_position_encoding(key, max_len, embedding_num):
    position = jnp.arange(1, max_len + 1, dtype=jnp.float32)[:, None]
    # reference uses torch.rand(50).sort(descending=True); adapt size to E//2
    div_term = jnp.sort(jax.random.uniform(key, (embedding_num // 2,)))[::-1]
    pe = jnp.zeros((max_len, embedding_num), jnp.float32)
    pe = pe.at[:, 0::2].set(jnp.sin(position * div_term))
    pe = pe.at[:, 1::2].set(jnp.cos(position * div_term))
    return pe


if __name__ == "__main__":
    B, S, E, H, FF = 2, 8, 64, 2, 128
    MAX_LEN, N_BLOCKS = 16, 2
    datas_len = [8, 5]

    key = jax.random.PRNGKey(0)
    keys = jax.random.split(key, 4 + 10 * N_BLOCKS)

    x = jax.random.normal(keys[0], (B, S, E), jnp.float32)
    pe = make_position_encoding(keys[1], MAX_LEN, E)

    def init_linear(k, i, o):
        return (jax.random.normal(k, (i, o), jnp.float32) * 0.05).astype(jnp.float32)

    blocks = []
    kidx = 2
    for _ in range(N_BLOCKS):
        p = {
            'wq': init_linear(keys[kidx + 0], E, E),
            'wk': init_linear(keys[kidx + 1], E, E),
            'wv': init_linear(keys[kidx + 2], E, E),  # exists in __init__, unused in forward
            'fc': init_linear(keys[kidx + 3], E, E),
            'ln1_g': 1.0 + 0.1 * jax.random.normal(keys[kidx + 4], (1, E), jnp.float32),
            'ln1_b': 0.1 * jax.random.normal(keys[kidx + 5], (1, E), jnp.float32),
            'ff1': init_linear(keys[kidx + 6], E, FF),
            'ff2': init_linear(keys[kidx + 7], FF, E),
            'ln2_g': 1.0 + 0.1 * jax.random.normal(keys[kidx + 8], (1, E), jnp.float32),
            'ln2_b': 0.1 * jax.random.normal(keys[kidx + 9], (1, E), jnp.float32),
        }
        kidx += 10
        blocks.append(p)

    # TODO(synk): nn.Dropout(0.3) in PositionEncoder skipped (eval/inference semantics).
    out = transformer_encoder_forward(x, pe, blocks, datas_len, H, batch_tiles=2)
    out = jax.block_until_ready(out)

    # sanity check vs pure-JAX reference (bf16-rounded weights, f32 math)
    ref = x + pe[:S]
    for p in blocks:
        ref = _ref_block(ref, p, H)

    assert out.shape == (B, S, E)
    assert bool(jnp.all(jnp.isfinite(out))), "non-finite values in kernel output"
    assert jnp.allclose(out, ref, atol=2.5e-2, rtol=2.5e-2), "mismatch vs reference"

    print("KERNEL_OK")
</pallas_src>

<mosaic_0001>
module attributes {stable_mosaic.version = 11 : i64} {
  func.func @fused_encoder_kernel(%arg0: i32, %arg1: i32, %arg2: memref<8x64xf32, #tpu.memory_space<vmem>>, %arg3: memref<1x64x128xbf16, #tpu.memory_space<vmem>>, %arg4: memref<1x64x64xbf16, #tpu.memory_space<vmem>>, %arg5: memref<1x1x64xf32, #tpu.memory_space<vmem>>, %arg6: memref<1x1x64xf32, #tpu.memory_space<vmem>>, %arg7: memref<1x64x128xbf16, #tpu.memory_space<vmem>>, %arg8: memref<1x128x64xbf16, #tpu.memory_space<vmem>>, %arg9: memref<1x1x64xf32, #tpu.memory_space<vmem>>, %arg10: memref<1x1x64xf32, #tpu.memory_space<vmem>>, %arg11: memref<8x64xf32, #tpu.memory_space<vmem>>) attributes {dimension_semantics = [#tpu.dimension_semantics<parallel>, #tpu.dimension_semantics<arbitrary>], iteration_bounds = array<i64: 2, 2>, scalar_prefetch = 0 : i64, scratch_operands = 0 : i64, tpu.core_type = #tpu.core_type<tc>, window_params = [{transform_indices = @transform_0, window_bounds = array<i64: 8, 64>}, {transform_indices = @transform_1, window_bounds = array<i64: 1, 64, 128>}, {transform_indices = @transform_2, window_bounds = array<i64: 1, 64, 64>}, {transform_indices = @transform_3, window_bounds = array<i64: 1, 1, 64>}, {transform_indices = @transform_4, window_bounds = array<i64: 1, 1, 64>}, {transform_indices = @transform_5, window_bounds = array<i64: 1, 64, 128>}, {transform_indices = @transform_6, window_bounds = array<i64: 1, 128, 64>}, {transform_indices = @transform_7, window_bounds = array<i64: 1, 1, 64>}, {transform_indices = @transform_8, window_bounds = array<i64: 1, 1, 64>}, {transform_indices = @transform_9, window_bounds = array<i64: 8, 64>}]} {
    %c0_i32 = arith.constant 0 : i32
    %0 = arith.cmpi eq, %arg1, %c0_i32 : i32
    %1 = arith.extui %0 : i1 to i32
    %c0_i32_0 = arith.constant 0 : i32
    %2 = arith.cmpi ne, %1, %c0_i32_0 : i32
    scf.if %2 {
      %c0_52 = arith.constant 0 : index
      %c0_53 = arith.constant 0 : index
      %119 = vector.load %arg2[%c0_52, %c0_53] : memref<8x64xf32, #tpu.memory_space<vmem>>, vector<8x64xf32>
      %c0_54 = arith.constant 0 : index
      %c0_55 = arith.constant 0 : index
      %120 = vector.load %arg11[%c0_54, %c0_55] : memref<8x64xf32, #tpu.memory_space<vmem>>, vector<8x64xf32>
      tpu.vector_store %arg11[%c0_54, %c0_55], %119 {strides = array<i32>} : memref<8x64xf32, #tpu.memory_space<vmem>>, vector<8x64xf32>,
    } else {
    }
    %c0 = arith.constant 0 : index
    %c0_1 = arith.constant 0 : index
    %3 = vector.load %arg11[%c0, %c0_1] : memref<8x64xf32, #tpu.memory_space<vmem>>, vector<8x64xf32>
    %4 = arith.truncf %3 : vector<8x64xf32> to vector<8x64xbf16>
    %c0_2 = arith.constant 0 : index
    %c0_3 = arith.constant 0 : index
    %c0_4 = arith.constant 0 : index
    %5 = vector.load %arg3[%c0_2, %c0_3, %c0_4] : memref<1x64x128xbf16, #tpu.memory_space<vmem>>, vector<1x64x128xbf16>
    %6 = vector.shape_cast %5 : vector<1x64x128xbf16> to vector<64x128xbf16>
    %cst = arith.constant dense<0.000000e+00> : vector<8x128xf32>
    %7 = tpu.matmul %4, %6, %cst {dimension_numbers = #tpu.dot_dimension_numbers<[1], [0], [0], [1], [0, 0, 1, 1], [], []>} : vector<8x64xbf16>, vector<64x128xbf16>, vector<8x128xf32> -> vector<8x128xf32>
    %8 = vector.extract_strided_slice %7 {offsets = [0, 0], sizes = [8, 32], strides = [1, 1]} : vector<8x128xf32> to vector<8x32xf32>
    %9 = vector.shape_cast %8 : vector<8x32xf32> to vector<1x8x32xf32>
    %10 = vector.extract_strided_slice %7 {offsets = [0, 64], sizes = [8, 32], strides = [1, 1]} : vector<8x128xf32> to vector<8x32xf32>
    %11 = vector.shape_cast %10 : vector<8x32xf32> to vector<1x8x32xf32>
    "tpu.trace_start"() <{level = 10 : i32, message = "bqd,bkd->bqk"}> : () -> ()
    %cst_5 = arith.constant dense<0.000000e+00> : vector<1x8x8xf32>
    %12 = tpu.matmul %9, %11, %cst_5 {dimension_numbers = #tpu.dot_dimension_numbers<[2], [2], [1], [1], [0, 0, 0, 1, 1, 1], [0], [0]>} : vector<1x8x32xf32>, vector<1x8x32xf32>, vector<1x8x8xf32> -> vector<1x8x8xf32>
    "tpu.trace_stop"() : () -> ()
    %cst_6 = arith.constant 0.176776692 : f32
    %13 = vector.broadcast %cst_6 : f32 to vector<1x8x8xf32>
    %14 = arith.mulf %12, %13 : vector<1x8x8xf32>
    %cst_7 = arith.constant dense<0xFF800000> : vector<1x8xf32>
    %15 = vector.multi_reduction <maximumf>, %14, %cst_7 [2] : vector<1x8x8xf32> to vector<1x8xf32>
    %16 = vector.shape_cast %15 : vector<1x8xf32> to vector<1x8x1xf32>
    %17 = vector.broadcast %16 : vector<1x8x1xf32> to vector<1x8x8xf32>
    %18 = arith.subf %14, %17 : vector<1x8x8xf32>
    %19 = math.exp %18 : vector<1x8x8xf32>
    %cst_8 = arith.constant dense<0.000000e+00> : vector<1x8xf32>
    %20 = vector.multi_reduction <add>, %19, %cst_8 [2] : vector<1x8x8xf32> to vector<1x8xf32>
    %21 = vector.shape_cast %20 : vector<1x8xf32> to vector<1x8x1xf32>
    %22 = tpu.reciprocal %21 {approx = true} : vector<1x8x1xf32> -> vector<1x8x1xf32>
    %23 = vector.broadcast %22 : vector<1x8x1xf32> to vector<1x8x8xf32>
    %24 = arith.mulf %19, %23 : vector<1x8x8xf32>
    %25 = arith.truncf %24 : vector<1x8x8xf32> to vector<1x8x8xbf16>
    %26 = arith.truncf %11 : vector<1x8x32xf32> to vector<1x8x32xbf16>
    "tpu.trace_start"() <{level = 10 : i32, message = "bqk,bkd->bqd"}> : () -> ()
    %cst_9 = arith.constant dense<0.000000e+00> : vector<1x8x32xf32>
    %27 = tpu.matmul %25, %26, %cst_9 {dimension_numbers = #tpu.dot_dimension_numbers<[2], [1], [1], [2], [0, 0, 0, 1, 1, 2], [0], [0]>} : vector<1x8x8xbf16>, vector<1x8x32xbf16>, vector<1x8x32xf32> -> vector<1x8x32xf32>
    "tpu.trace_stop"() : () -> ()
    %28 = vector.extract_strided_slice %7 {offsets = [0, 32], sizes = [8, 32], strides = [1, 1]} : vector<8x128xf32> to vector<8x32xf32>
    %29 = vector.shape_cast %28 : vector<8x32xf32> to vector<1x8x32xf32>
    %30 = vector.extract_strided_slice %7 {offsets = [0, 96], sizes = [8, 32], strides = [1, 1]} : vector<8x128xf32> to vector<8x32xf32>
    %31 = vector.shape_cast %30 : vector<8x32xf32> to vector<1x8x32xf32>
    "tpu.trace_start"() <{level = 10 : i32, message = "bqd,bkd->bqk"}> : () -> ()
    %cst_10 = arith.constant dense<0.000000e+00> : vector<1x8x8xf32>
    %32 = tpu.matmul %29, %31, %cst_10 {dimension_numbers = #tpu.dot_dimension_numbers<[2], [2], [1], [1], [0, 0, 0, 1, 1, 1], [0], [0]>} : vector<1x8x32xf32>, vector<1x8x32xf32>, vector<1x8x8xf32> -> vector<1x8x8xf32>
    "tpu.trace_stop"() : () -> ()
    %cst_11 = arith.constant 0.176776692 : f32
    %33 = vector.broadcast %cst_11 : f32 to vector<1x8x8xf32>
    %34 = arith.mulf %32, %33 : vector<1x8x8xf32>
    %cst_12 = arith.constant dense<0xFF800000> : vector<1x8xf32>
    %35 = vector.multi_reduction <maximumf>, %34, %cst_12 [2] : vector<1x8x8xf32> to vector<1x8xf32>
    %36 = vector.shape_cast %35 : vector<1x8xf32> to vector<1x8x1xf32>
    %37 = vector.broadcast %36 : vector<1x8x1xf32> to vector<1x8x8xf32>
    %38 = arith.subf %34, %37 : vector<1x8x8xf32>
    %39 = math.exp %38 : vector<1x8x8xf32>
    %cst_13 = arith.constant dense<0.000000e+00> : vector<1x8xf32>
    %40 = vector.multi_reduction <add>, %39, %cst_13 [2] : vector<1x8x8xf32> to vector<1x8xf32>
    %41 = vector.shape_cast %40 : vector<1x8xf32> to vector<1x8x1xf32>
    %42 = tpu.reciprocal %41 {approx = true} : vector<1x8x1xf32> -> vector<1x8x1xf32>
    %43 = vector.broadcast %42 : vector<1x8x1xf32> to vector<1x8x8xf32>
    %44 = arith.mulf %39, %43 : vector<1x8x8xf32>
    %45 = arith.truncf %44 : vector<1x8x8xf32> to vector<1x8x8xbf16>
    %46 = arith.truncf %31 : vector<1x8x32xf32> to vector<1x8x32xbf16>
    "tpu.trace_start"() <{level = 10 : i32, message = "bqk,bkd->bqd"}> : () -> ()
    %cst_14 = arith.constant dense<0.000000e+00> : vector<1x8x32xf32>
    %47 = tpu.matmul %45, %46, %cst_14 {dimension_numbers = #tpu.dot_dimension_numbers<[2], [1], [1], [2], [0, 0, 0, 1, 1, 2], [0], [0]>} : vector<1x8x8xbf16>, vector<1x8x32xbf16>, vector<1x8x32xf32> -> vector<1x8x32xf32>
    "tpu.trace_stop"() : () -> ()
    %48 = tpu.concatenate %27, %47 in 2 : vector<1x8x32xf32>, vector<1x8x32xf32> -> vector<1x8x64xf32>
    %49 = vector.shape_cast %48 : vector<1x8x64xf32> to vector<8x64xf32>
    %50 = arith.truncf %49 : vector<8x64xf32> to vector<8x64xbf16>
    %c0_15 = arith.constant 0 : index
    %c0_16 = arith.constant 0 : index
    %c0_17 = arith.constant 0 : index
    %51 = vector.load %arg4[%c0_15, %c0_16, %c0_17] : memref<1x64x64xbf16, #tpu.memory_space<vmem>>, vector<1x64x64xbf16>
    %52 = vector.shape_cast %51 : vector<1x64x64xbf16> to vector<64x64xbf16>
    %cst_18 = arith.constant dense<0.000000e+00> : vector<8x64xf32>
    %53 = tpu.matmul %50, %52, %cst_18 {dimension_numbers = #tpu.dot_dimension_numbers<[1], [0], [0], [1], [0, 0, 1, 1], [], []>} : vector<8x64xbf16>, vector<64x64xbf16>, vector<8x64xf32> -> vector<8x64xf32>
    %54 = arith.addf %3, %53 : vector<8x64xf32>
    %cst_19 = arith.constant dense<0.000000e+00> : vector<8xf32>
    %55 = vector.multi_reduction <add>, %54, %cst_19 [1] : vector<8x64xf32> to vector<8xf32>
    %56 = vector.shape_cast %55 : vector<8xf32> to vector<8x1xf32>
    %cst_20 = arith.constant 6.400000e+01 : f32
    %57 = vector.broadcast %cst_20 : f32 to vector<8x1xf32>
    %58 = arith.divf %56, %57 : vector<8x1xf32>
    %59 = vector.broadcast %58 : vector<8x1xf32> to vector<8x64xf32>
    %60 = arith.subf %54, %59 : vector<8x64xf32>
    %61 = arith.mulf %60, %60 : vector<8x64xf32>
    %cst_21 = arith.constant dense<0.000000e+00> : vector<8xf32>
    %62 = vector.multi_reduction <add>, %61, %cst_21 [1] : vector<8x64xf32> to vector<8xf32>
    %63 = vector.shape_cast %62 : vector<8xf32> to vector<8x1xf32>
    %cst_22 = arith.constant 6.400000e+01 : f32
    %64 = vector.broadcast %cst_22 : f32 to vector<8x1xf32>
    %65 = arith.divf %63, %64 : vector<8x1xf32>
    %66 = vector.broadcast %58 : vector<8x1xf32> to vector<8x64xf32>
    %67 = arith.subf %54, %66 : vector<8x64xf32>
    %cst_23 = arith.constant 9.99999974E-6 : f32
    %68 = vector.broadcast %cst_23 : f32 to vector<8x1xf32>
    %69 = arith.addf %65, %68 : vector<8x1xf32>
    %70 = math.rsqrt %69 : vector<8x1xf32>
    %71 = vector.broadcast %70 : vector<8x1xf32> to vector<8x64xf32>
    %72 = arith.mulf %67, %71 : vector<8x64xf32>
    %c0_24 = arith.constant 0 : index
    %c0_25 = arith.constant 0 : index
    %c0_26 = arith.constant 0 : index
    %73 = vector.load %arg5[%c0_24, %c0_25, %c0_26] : memref<1x1x64xf32, #tpu.memory_space<vmem>>, vector<1x1x64xf32>
    %74 = vector.shape_cast %73 : vector<1x1x64xf32> to vector<1x64xf32>
    %75 = vector.broadcast %74 : vector<1x64xf32> to vector<8x64xf32>
    %76 = arith.mulf %72, %75 : vector<8x64xf32>
    %c0_27 = arith.constant 0 : index
    %c0_28 = arith.constant 0 : index
    %c0_29 = arith.constant 0 : index
    %77 = vector.load %arg6[%c0_27, %c0_28, %c0_29] : memref<1x1x64xf32, #tpu.memory_space<vmem>>, vector<1x1x64xf32>
    %78 = vector.shape_cast %77 : vector<1x1x64xf32> to vector<1x64xf32>
    %79 = vector.broadcast %78 : vector<1x64xf32> to vector<8x64xf32>
    %80 = arith.addf %76, %79 : vector<8x64xf32>
    %81 = arith.truncf %80 : vector<8x64xf32> to vector<8x64xbf16>
    %c0_30 = arith.constant 0 : index
    %c0_31 = arith.constant 0 : index
    %c0_32 = arith.constant 0 : index
    %82 = vector.load %arg7[%c0_30, %c0_31, %c0_32] : memref<1x64x128xbf16, #tpu.memory_space<vmem>>, vector<1x64x128xbf16>
    %83 = vector.shape_cast %82 : vector<1x64x128xbf16> to vector<64x128xbf16>
    %cst_33 = arith.constant dense<0.000000e+00> : vector<8x128xf32>
    %84 = tpu.matmul %81, %83, %cst_33 {dimension_numbers = #tpu.dot_dimension_numbers<[1], [0], [0], [1], [0, 0, 1, 1], [], []>} : vector<8x64xbf16>, vector<64x128xbf16>, vector<8x128xf32> -> vector<8x128xf32>
    %cst_34 = arith.constant 0.000000e+00 : f32
    %85 = vector.broadcast %cst_34 : f32 to vector<8x128xf32>
    %86 = arith.maximumf %84, %85 : vector<8x128xf32>
    %87 = arith.truncf %86 : vector<8x128xf32> to vector<8x128xbf16>
    %c0_35 = arith.constant 0 : index
    %c0_36 = arith.constant 0 : index
    %c0_37 = arith.constant 0 : index
    %88 = vector.load %arg8[%c0_35, %c0_36, %c0_37] : memref<1x128x64xbf16, #tpu.memory_space<vmem>>, vector<1x128x64xbf16>
    %89 = vector.shape_cast %88 : vector<1x128x64xbf16> to vector<128x64xbf16>
    %cst_38 = arith.constant dense<0.000000e+00> : vector<8x64xf32>
    %90 = tpu.matmul %87, %89, %cst_38 {dimension_numbers = #tpu.dot_dimension_numbers<[1], [0], [0], [1], [0, 0, 1, 1], [], []>} : vector<8x128xbf16>, vector<128x64xbf16>, vector<8x64xf32> -> vector<8x64xf32>
    %91 = arith.addf %80, %90 : vector<8x64xf32>
    %cst_39 = arith.constant dense<0.000000e+00> : vector<8xf32>
    %92 = vector.multi_reduction <add>, %91, %cst_39 [1] : vector<8x64xf32> to vector<8xf32>
    %93 = vector.shape_cast %92 : vector<8xf32> to vector<8x1xf32>
    %cst_40 = arith.constant 6.400000e+01 : f32
    %94 = vector.broadcast %cst_40 : f32 to vector<8x1xf32>
    %95 = arith.divf %93, %94 : vector<8x1xf32>
    %96 = vector.broadcast %95 : vector<8x1xf32> to vector<8x64xf32>
    %97 = arith.subf %91, %96 : vector<8x64xf32>
    %98 = arith.mulf %97, %97 : vector<8x64xf32>
    %cst_41 = arith.constant dense<0.000000e+00> : vector<8xf32>
    %99 = vector.multi_reduction <add>, %98, %cst_41 [1] : vector<8x64xf32> to vector<8xf32>
    %100 = vector.shape_cast %99 : vector<8xf32> to vector<8x1xf32>
    %cst_42 = arith.constant 6.400000e+01 : f32
    %101 = vector.broadcast %cst_42 : f32 to vector<8x1xf32>
    %102 = arith.divf %100, %101 : vector<8x1xf32>
    %103 = vector.broadcast %95 : vector<8x1xf32> to vector<8x64xf32>
    %104 = arith.subf %91, %103 : vector<8x64xf32>
    %cst_43 = arith.constant 9.99999974E-6 : f32
    %105 = vector.broadcast %cst_43 : f32 to vector<8x1xf32>
    %106 = arith.addf %102, %105 : vector<8x1xf32>
    %107 = math.rsqrt %106 : vector<8x1xf32>
    %108 = vector.broadcast %107 : vector<8x1xf32> to vector<8x64xf32>
    %109 = arith.mulf %104, %108 : vector<8x64xf32>
    %c0_44 = arith.constant 0 : index
    %c0_45 = arith.constant 0 : index
    %c0_46 = arith.constant 0 : index
    %110 = vector.load %arg9[%c0_44, %c0_45, %c0_46] : memref<1x1x64xf32, #tpu.memory_space<vmem>>, vector<1x1x64xf32>
    %111 = vector.shape_cast %110 : vector<1x1x64xf32> to vector<1x64xf32>
    %112 = vector.broadcast %111 : vector<1x64xf32> to vector<8x64xf32>
    %113 = arith.mulf %109, %112 : vector<8x64xf32>
    %c0_47 = arith.constant 0 : index
    %c0_48 = arith.constant 0 : index
    %c0_49 = arith.constant 0 : index
    %114 = vector.load %arg10[%c0_47, %c0_48, %c0_49] : memref<1x1x64xf32, #tpu.memory_space<vmem>>, vector<1x1x64xf32>
    %115 = vector.shape_cast %114 : vector<1x1x64xf32> to vector<1x64xf32>
    %116 = vector.broadcast %115 : vector<1x64xf32> to vector<8x64xf32>
    %117 = arith.addf %113, %116 : vector<8x64xf32>
    %c0_50 = arith.constant 0 : index
    %c0_51 = arith.constant 0 : index
    %118 = vector.load %arg11[%c0_50, %c0_51] : memref<8x64xf32, #tpu.memory_space<vmem>>, vector<8x64xf32>
    tpu.vector_store %arg11[%c0_50, %c0_51], %117 {strides = array<i32>} : memref<8x64xf32, #tpu.memory_space<vmem>>, vector<8x64xf32>,
    return
  }
  func.func @transform_0(%arg0: i32, %arg1: i32) -> (i32, i32) {
    %c0_i32 = arith.constant 0 : i32
    %c0_i32_0 = arith.constant 0 : i32
    return %arg0, %c0_i32 : i32, i32
  }
  func.func @transform_1(%arg0: i32, %arg1: i32) -> (i32, i32, i32) {
    %c0_i32 = arith.constant 0 : i32
    %c0_i32_0 = arith.constant 0 : i32
    %c0_i32_1 = arith.constant 0 : i32
    return %arg1, %c0_i32, %c0_i32_0 : i32, i32, i32
  }
  func.func @transform_2(%arg0: i32, %arg1: i32) -> (i32, i32, i32) {
    %c0_i32 = arith.constant 0 : i32
    %c0_i32_0 = arith.constant 0 : i32
    %c0_i32_1 = arith.constant 0 : i32
    return %arg1, %c0_i32, %c0_i32_0 : i32, i32, i32
  }
  func.func @transform_3(%arg0: i32, %arg1: i32) -> (i32, i32, i32) {
    %c0_i32 = arith.constant 0 : i32
    %c0_i32_0 = arith.constant 0 : i32
    %c0_i32_1 = arith.constant 0 : i32
    return %arg1, %c0_i32, %c0_i32_0 : i32, i32, i32
  }
  func.func @transform_4(%arg0: i32, %arg1: i32) -> (i32, i32, i32) {
    %c0_i32 = arith.constant 0 : i32
    %c0_i32_0 = arith.constant 0 : i32
    %c0_i32_1 = arith.constant 0 : i32
    return %arg1, %c0_i32, %c0_i32_0 : i32, i32, i32
  }
  func.func @transform_5(%arg0: i32, %arg1: i32) -> (i32, i32, i32) {
    %c0_i32 = arith.constant 0 : i32
    %c0_i32_0 = arith.constant 0 : i32
    %c0_i32_1 = arith.constant 0 : i32
    return %arg1, %c0_i32, %c0_i32_0 : i32, i32, i32
  }
  func.func @transform_6(%arg0: i32, %arg1: i32) -> (i32, i32, i32) {
    %c0_i32 = arith.constant 0 : i32
    %c0_i32_0 = arith.constant 0 : i32
    %c0_i32_1 = arith.constant 0 : i32
    return %arg1, %c0_i32, %c0_i32_0 : i32, i32, i32
  }
  func.func @transform_7(%arg0: i32, %arg1: i32) -> (i32, i32, i32) {
    %c0_i32 = arith.constant 0 : i32
    %c0_i32_0 = arith.constant 0 : i32
    %c0_i32_1 = arith.constant 0 : i32
    return %arg1, %c0_i32, %c0_i32_0 : i32, i32, i32
  }
  func.func @transform_8(%arg0: i32, %arg1: i32) -> (i32, i32, i32) {
    %c0_i32 = arith.constant 0 : i32
    %c0_i32_0 = arith.constant 0 : i32
    %c0_i32_1 = arith.constant 0 : i32
    return %arg1, %c0_i32, %c0_i32_0 : i32, i32, i32
  }
  func.func @transform_9(%arg0: i32, %arg1: i32) -> (i32, i32) {
    %c0_i32 = arith.constant 0 : i32
    %c0_i32_0 = arith.constant 0 : i32
    return %arg0, %c0_i32 : i32, i32
  }
}

</mosaic_0001>

<bundles_post_ra>
// kernel: tpu_custom_call.1
= control target key start
LH: loop header
LB: loop body
LE: loop exit
PB: predicated region body
PF: predicated region fallthrough
CT: control target
= control target key end

     0   :  { %s2139_s0 = inlined_call_operand.hbm [shape: f32[16,64], index: 0, kind: input, shape index: {}]   ;;  %s2140_s1 = inlined_call_operand.vmem [shape: bf16[2,64,128], index: 1, kind: input, shape index: {}]   ;;  %s2141_s2 = inlined_call_operand.vmem [shape: bf16[2,64,64], index: 2, kind: input, shape index: {}]   ;;  %s2142_s3 = inlined_call_operand.vmem [shape: f32[2,1,64], index: 3, kind: input, shape index: {}]   ;;  %s2143_s4 = inlined_call_operand.vmem [shape: f32[2,1,64], index: 4, kind: input, shape index: {}]   ;;  %s2144_s5 = inlined_call_operand.vmem [shape: bf16[2,64,128], index: 5, kind: input, shape index: {}]   ;;  %s2145_s6 = inlined_call_operand.vmem [shape: bf16[2,128,64], index: 6, kind: input, shape index: {}]   ;;  %s2146_s7 = inlined_call_operand.vmem [shape: f32[2,1,64], index: 7, kind: input, shape index: {}]   ;;  %s2147_s8 = inlined_call_operand.vmem [shape: f32[2,1,64], index: 8, kind: input, shape index: {}]   ;;  %s2148_s9 = inlined_call_operand.hbm [shape: f32[16,64], index: 9, kind: output, shape index: {}]  }
   0x1   :  { %2159 = sst [smem:[#allocation18_spill]] %s2139_s0 }
   0x2   :  { %2160 = sst [smem:[#allocation19_spill]] %s2140_s1 }
   0x3   :  { %2161 = sst [smem:[#allocation20_spill]] %s2141_s2 }
   0x4   :  { %2162 = sst [smem:[#allocation21_spill]] %s2148_s9 }
   0x5   :  { %14 = vsyncpa [#allocation3], 0 }
   0x6   :  { %16 = vsyncpa [#allocation3 + $0x1], 0 }
   0x7   :  { %17 = vsyncpa [#allocation4], 0 }
   0x8   :  { %19 = vsyncpa [#allocation4 + $0x1], 0  ;;  %s1835_s30 = smov 0   ;;  %s1837_s10 = smov 0  }
   0x9   :  { %s1839_s11 = smov 0   ;;  %s1841_s12 = smov 0  }
   0xa   :  { %s1843_s13 = smov 0   ;;  %s1845_s14 = smov 0  }
   0xb   :  { %s1847_s15 = smov 0   ;;  %s1849_s16 = smov 0  }
   0xc LB: > { %2163 = sst [smem:[#allocation8_spill]] %s1748_s30  ;;  %s1368_s17 = sadd.s32 4294967295, %s1776_s16   ;;  %s1776_s16 = sphi %s1849_s16, %s25_s16   ;;  %s1772_s15 = sphi %s1847_s15, %s2194_s15   ;;  %s1768_s14 = sphi %s1845_s14, %s2193_s14   ;;  %s1764_s13 = sphi %s1843_s13, %s2192_s13   ;;  %s1760_s12 = sphi %s1841_s12, %s2191_s12   ;;  %s1756_s11 = sphi %s1839_s11, %s2190_s11   ;;  %s1752_s10 = sphi %s1837_s10, %s2189_s10   ;;  %s1748_s30 = sphi %s1835_s30, %s2188_s30  }
   0xd   : > { %2164 = sst [smem:[#allocation9_spill]] %s1752_s10  ;;  %s1369_s18 = sadd.s32 4294967294, %s1776_s16  }
   0xe   : > { %2165 = sst [smem:[#allocation10_spill]] %s1756_s11  ;;  %s34_s19 = sadd.s32 1, %s1768_s14 }
   0xf   : > { %2166 = sst [smem:[#allocation11_spill]] %s1768_s14  ;;  %s37_s20 = sadd.s32 1, %s1772_s15 }
  0x10   : > { %2167 = sst [smem:[#allocation12_spill]] %s1772_s15  ;;  %p35_p0 = scmp.ge.s32.totalorder %s34_s19, 2 }
  0x11   : > { %2168 = sst [smem:[#allocation13_spill]] %s1776_s16  ;;  %s44_s21 = sadd.s32 1, %s1756_s11 }
  0x12   : > { %p51_p1 = scmp.ne.s32.totalorder %s1756_s11, %s1752_s10  ;;  %p52_p2 = scmp.eq.s32.totalorder %s1776_s16, 0 }
  0x13   : > { %s2196_s19 = smov (%p35_p0, %s34_s19), 0  ;;  %s2198_s20 = smov (!%p35_p0, %s37_s20), %s1772_s15 }
  0x14   : > { %2169 = sst [smem:[#allocation14_spill]] %s2196_s19  ;;  %p1886_p3 = por %p52_p2, %p51_p1 }
  0x15   : > { %p57_p4 = scmp.ne.s32.totalorder %s1752_s10, %s1748_s30  ;;  %p39_p5 = scmp.ge.s32.totalorder %s2198_s20, 2 }
  0x16   : > { %p58_p6 = scmp.eq.s32.totalorder %s1368_s17, 0  ;;  %p289_p7 = scmp.eq.s32.totalorder %s1368_s17, 3 }
  0x17   : > { %p295_p8 = scmp.eq.s32.totalorder %s1369_s18, 3  ;;  %s2200_s20 = smov (%p39_p5, %s2198_s20), 0 }
  0x18   : > { %2171 = sst [smem:[#allocation15_spill]] %s2200_s20  ;;  %p1894_p9 = por %p58_p6, %p57_p4 }
  0x19   : > { %p1898_p10 = por %p289_p7, %p51_p1  ;;  %s41_s25 = ssub.s32 %s1772_s15, %s2200_s20 }
  0x1a   : > { %p1904_p11 = por %p295_p8, %p57_p4  ;;  %p42_p12 = scmp.eq.s32.totalorder %s41_s25, 0 }
  0x1b   : > { %p1549_p13 = scmp.lt.s32.totalorder %s1776_s16, 4  ;;  %s315_s27 = sand.u32 1, %s1756_s11  }
  0x1c   : > { %s2174_s26 = scalar_select %p1904_p11, 1, 0 }
  0x1d   : > { %s1911_s28 = scalar_select %p42_p12, %s1756_s11, %s44_s21  }
  0x1e   : > { %2175 = sst [smem:[#allocation16_spill]] %s2174_s26  ;;  %s1372_s29 = sshll.u32 %s315_s27, 3 }
  0x1f   : > { %2176 = sst [smem:[#allocation17_spill]] %s1911_s28  ;;  %s1373_s17 = sshll.u32 %s1772_s15, 7 }
  0x20   : > { %s2177_s0 = sld [smem:[#allocation18_spill]]  ;;  %s319_s30 = scalar_lea.vmem [#allocation2], %s1372_s29 }
  0x21   : > { %s326_s9 = sshll.u32 %s319_s30, 4  ;;  %p1919_p0 = pnand %p1549_p13, %p1886_p3  ;;  %s327_s9 = int_to_ptr.vmem [resolvable:$true] %s326_s9 }
  0x22   : > { %p1374_p1 = scmp.ge.s32.totalorder %s1776_s16, 1  ;;  %p387_p2 = scmp.lt.s32.totalorder %s1776_s16, 5 }
  0x23   : > { %s316_s25 = scalar_lea.sflag [#allocation3], %s315_s27  ;;  %p1654_p4 = pneg %p1919_p0 }
  0x24   : > { %s1665_s21 = scalar_lea.vmem %s327_s9, 128  ;;  %s1778_s19 = smov [#allocation2]  }
  0x25   : > { %p1666_p5 = scmp.ne.s32.totalorder %s327_s9, %s1665_s21 }
  0x26   : > { %s324_s14 = scalar_lea.hbm %s2177_s0, %s1373_s17  ;;  %s1670_s17 = sshll.u32 %s1778_s19, 4  ;;  %s1671_s17 = int_to_ptr.vmem [resolvable:$false] %s1670_s17 }
  0x27   : > { %p1668_p6 = pnand %p1666_p5, %p1654_p4  ;;  %s1672_s30 = scalar_lea.vmem %s1671_s17, 256 }
  0x28   : > { %p1673_p8 = scmp.lt.s32.totalorder %s327_s9, %s1671_s17  ;;  %p1674_p12 = scmp.lt.s32.totalorder %s1672_s30, %s1665_s21 }
  0x29   : > { %p1669_p7 = pneg %p1668_p6 }
  0x2a   : > { %p1675_p3 = por %p1674_p12, %p1673_p8 }
  0x2c   : > { %p1676_p13 = pnand %p1675_p3, %p1669_p7 }
  0x2e   : > { %1679 = shalt.err (!%p1676_p13)
}
  0x2f   : > { %1544 = dma.hbm_to_vmem [thread:$0]  (!%p1919_p0), %s324_s14, 128, %s327_s9, %s316_s25  }
  0x30   : > { %p388_p11 = pnand %p1374_p1, %p387_p2 }
  0x31   : > { %s1934_s22 = sand.u32 (!%p388_p11), 1, %s1752_s10  }
  0x32   : > { %391 = sbr.rel (%p388_p11) target bundleno = 2954 (0xb8a), region = 56  ;;  %s1375_s27 = sshll.u32 (!%p388_p11), %s1934_s22, 3 }
  0x33   : > { %s394_s29 = scalar_lea.sflag (!%p388_p11), [#allocation3], %s1934_s22  ;;  %s397_s18 = scalar_lea.vmem (!%p388_p11), [#allocation2], %s1375_s27 }
  0x37   : > { %1739 = dma.done.wait (%p1894_p9), %s394_s29, 128  }
  0x38   : > { %1741 = vsyncadd (%p1894_p9), %s394_s29, 4294967168  ;;  %p464_p0 = scmp.lt.s32.totalorder %s1760_s12, 1  ;;  %s2179_s1 = sld [smem:[#allocation19_spill]] }
  0x39   : > { %s2180_s2 = sld [smem:[#allocation20_spill]]  ;;  %s1982_s28 = scalar_lea.vmem [#allocation5], %s1375_s27 }
  0x3a   : > { %s1944_s9 = scalar_select %p464_p0, %s1760_s12, 1 }
  0x3b   : > { %p1385_p9 = scmp.ne.s32.totalorder %s1760_s12, 0 }
  0x3c   : > { %s1423_s14 = sshll.u32 %s1944_s9, 5  ;;  %s479_s11 = scalar_lea.vmem %s2143_s4, %s1944_s9 }
  0x3d   : > { %s1966_s16 = scalar_lea.vmem %s2144_s5, %s1423_s14  ;;  %s1426_s20 = sshll.u32 %s1944_s9, 6 }
  0x3e   : > { %s468_s23 = scalar_lea.vmem %s2179_s1, %s1423_s14  ;;  %s492_s19 = scalar_lea.vmem %s2146_s7, %s1944_s9 }
  0x3f   : > { %s1957_s0 = scalar_lea.vmem %s2180_s2, %s1423_s14  ;;  %s1976_s30 = scalar_lea.vmem %s2145_s6, %s1426_s20 }
  0x40   : > { %s495_s15 = scalar_lea.vmem %s2147_s8, %s1944_s9  ;;  %500 = sbr.rel (%p1385_p9) target bundleno = 71 (0x47), region = 64 }
  0x45   : > { %v501_v0 = vld [vmem:[%s397_s18] sm:$0xff]  ;;  %vm502_vm0 = vcmask 523264  }
  0x46   : > { %503 = vst.msk [vmem:[%s1982_s28] sm:$0xff] %vm502_vm0, %v501_v0 }
  0x47 PF: > { %v1620_v1 = vld [vmem:[%s468_s23 + $0x18] sm:$0xff]   ;;  %v1779_v2 = vmov 0.0   ;;  %v1621_v3 = vld [vmem:[%s468_s23 + $0x10] sm:$0xff]   ;;  %vm1780_vm1 = vmmov 0   ;;  %v1622_v4 = vld [vmem:[%s468_s23 + $0x8] sm:$0xff]   ;;  %vm538_vm2 = vcmask 523264  }
  0x48   : > { %1459 = vmatprep.subr.bf16.mxu0 %v1779_v2  ;;  %1471 = vmatprep.subr.mxu1 %v1779_v2  ;;  %v1623_v5 = vld [vmem:[%s468_s23] sm:$0xff]   ;;  %s1781_s1 = smov 64   ;;  %vm585_vm3 = vcmask 261120   ;;  %vm681_vm4 = vcmask 1043456   ;;  %vm661_vm5 = vcmask 64512   ;;  %s1782_s2 = smov 32  }
  0x49   : > { %1460 = vmatpush3.bf16.msra.mxu0 %v1620_v1  ;;  %1467 = vmatprep.mubr.msk.bf16.mxu0 %vm1780_vm1, %v1779_v2  ;;  %s1783_s10 = smov 96   ;;  %v1624_v50 = vld [vmem:[%s1957_s0 + $0x18] sm:$0xff]   ;;  %v1625_v51 = vld [vmem:[%s1957_s0 + $0x10] sm:$0xff]   ;;  %v1626_v52 = vld [vmem:[%s1957_s0 + $0x8] sm:$0xff]   ;;  %s1420_s23 = sshll.u32 %s1764_s13, 7 }
  0x4a   : > { %1461 = vmatprep.subr.bf16.mxu0 %v1779_v2  ;;  %1473 = vmatprep.mubr.msk.f32.mxu1 %vm1780_vm1, %v1779_v2  ;;  %v1627_v53 = vld [vmem:[%s1957_s0] sm:$0xff]   ;;  %s1203_s20 = sshll.u32 %s1982_s28, 4  ;;  %s1204_s20 = int_to_ptr.vmem [resolvable:$true] %s1203_s20 }
  0x4d   : > { %1462 = vmatpush3.bf16.msra.mxu0 %v1621_v3  ;;  %v1995_v6 = vld [vmem:[%s1982_s28] sm:$0xff] }
  0x4e   : > { %1463 = vmatprep.subr.bf16.mxu0 %v1779_v2  ;;  %v505_v7 = vpack.c.bf16 %v1995_v6, %v1995_v6 }
  0x51   : > { %1464 = vmatpush3.bf16.msra.mxu0 %v1622_v4 }
  0x52   : > { %1465 = vmatprep.subr.bf16.mxu0 %v1779_v2 }
  0x55   : > { %1466 = vmatpush3.bf16.msra.mxu0 %v1623_v5 }
  0x56   : > { %1517 = vmatprep.subr.bf16.mxu0 %v1779_v2 }
  0x58   : > { %1468 = vmatmul.mubr.msk.bf16.vlgmr.msra.gmra.mxu0 %vm538_vm2, %v505_v7 }
  0x59   : > { %1533 = vmatprep.mubr.msk.bf16.mxu0 %vm1780_vm1, %v1779_v2 }
 0x118   : > { %v576_v8 = vpop.f32.mrf.mxu0 }
 0x119   : > { %583 = vrot.lane.b32.xlu0 %v576_v8, %s1781_s1  ;;  %v674_v9 = vpack.c.bf16 %v576_v8, %v576_v8 }
 0x11a   : > { %v1469_v10 = vpop.f32.mrf.mxu0 }
 0x11b   : > { %676 = vrot.lane.b32.xlu1 %v674_v9, %s1781_s1  ;;  %v1628_v10 = vld [vmem:[%s1966_s16 + $0x18] sm:$0xff]  }
 0x11c   : > { %v579_v11 = vpop.f32.mrf.mxu0 }
 0x11d   : > { %v1630_v11 = vld [vmem:[%s1966_s16 + $0x8] sm:$0xff]  }
 0x11e   : > { %v1470_v12 = vpop.f32.mrf.mxu0 }
 0x11f   : > { %v1631_v12 = vld [vmem:[%s1966_s16] sm:$0xff]  }
 0x18b   : > { %v584_v13 = vpop.permute.xlu0 %583 }
 0x18c   : > { %1472 = vmatpush3.xpose.msk.msra.mxu1 %vm585_vm3, %v584_v13  ;;  %v1632_v13 = vld [vmem:[%s1976_s30 + $0x38] sm:$0xff]  }
 0x18d   : > { %v677_v14 = vpop.permute.xlu1 %676  ;;  %1476 = vmatprep.subr.bf16.mxu1 %v1779_v2  ;;  %1518 = vmatpush3.bf16.msra.mxu0 %v1632_v13 }
 0x18e   : > { %v683_v15 = vsel %vm681_vm4, %v677_v14, 0  ;;  %v1633_v14 = vld [vmem:[%s1976_s30 + $0x30] sm:$0xff]   ;;  %1519 = vmatprep.subr.bf16.mxu0 %v1779_v2 }
 0x18f   : > { %1474 = vmatmul.mubr.msk.f32.vlgmr.msra.gmra.mxu1 %vm585_vm3, %v576_v8 }
 0x190   : > { %1477 = vmatpush3.bf16.msra.mxu1 %v683_v15  ;;  %1478 = vmatprep.mubr.msk.bf16.mxu1 %vm1780_vm1, %v1779_v2  ;;  %v1634_v15 = vld [vmem:[%s1976_s30 + $0x28] sm:$0xff]  }
 0x191   : > { %1482 = vmatprep.subr.mxu1 %v1779_v2  ;;  %1520 = vmatpush3.bf16.msra.mxu0 %v1633_v14 }
 0x192   : > { %1521 = vmatprep.subr.bf16.mxu0 %v1779_v2 }
 0x195   : > { %1522 = vmatpush3.bf16.msra.mxu0 %v1634_v15 }
 0x196   : > { %1523 = vmatprep.subr.bf16.mxu0 %v1779_v2 }
 0x24f   : > { %v656_v16 = vpop.f32.mrf.mxu1 }
 0x250   : > { %v660_v17 = vmul.f32 0.17677669, %v656_v16  ;;  %v1635_v16 = vld [vmem:[%s1976_s30 + $0x20] sm:$0xff]  }
 0x251   : > { %v1475_v18 = vpop.f32.mrf.mxu1  ;;  %1524 = vmatpush3.bf16.msra.mxu0 %v1635_v16 }
 0x252   : > { %v662_v19 = vsel %vm661_vm5, %v660_v17, -inf  ;;  %1525 = vmatprep.subr.bf16.mxu0 %v1779_v2  ;;  %v1637_v18 = vld [vmem:[%s1976_s30 + $0x10] sm:$0xff]  }
 0x253   : > { %663 = vmax.xlane.f32.xlu0 %v662_v19  ;;  %v1638_v19 = vld [vmem:[%s1976_s30 + $0x8] sm:$0xff]  }
 0x2dc   : > { %v664_v20 = vpop.xlane.xlu0 %663 }
 0x2dd   : > { %v665_v21 = vsub.f32 %v660_v17, %v664_v20  ;;  %v1636_v17 = vld [vmem:[%s1976_s30 + $0x18] sm:$0xff]  }
 0x2de   : > { %1526 = vmatpush3.bf16.msra.mxu0 %v1636_v17 }
 0x2df   : > { %v666_v22 = vmul.f32 1.442695, %v665_v21  ;;  %1527 = vmatprep.subr.bf16.mxu0 %v1779_v2 }
 0x2e1   : > { %1640 = vpow2.f32 %v666_v22 }
 0x2e2   : > { %1528 = vmatpush3.bf16.msra.mxu0 %v1637_v18 }
 0x2e3   : > { %1529 = vmatprep.subr.bf16.mxu0 %v1779_v2 }
 0x2e6   : > { %1530 = vmatpush3.bf16.msra.mxu0 %v1638_v19 }
 0x2e7   : > { %1531 = vmatprep.subr.bf16.mxu0 %v1779_v2 }
 0x2ee   : > { %v1641_v23 = vpop.eup %1640 }
 0x2ef   : > { %v668_v24 = vsel %vm661_vm5, %v1641_v23, 0.0 }
 0x2f0   : > { %669 = vadd.xlane.f32.xlu1 %v668_v24 }
 0x301   : > { %727 = vrot.lane.b32.xlu1 %v576_v8, %s1782_s2 }
 0x305   : > { %725 = vrot.lane.b32.xlu1 %v576_v8, %s1783_s10  ;;  %s1680_s10 = scalar_lea.vmem %s1204_s20, 128 }
 0x306   : > { %p1681_p11 = scmp.ne.s32.totalorder %s1204_s20, %s1680_s10 }
 0x308   : > { %p1682_p1 = pnand %p1681_p11, %p1898_p10 }
 0x30a   : > { %p1683_p2 = pneg %p1682_p1 }
 0x379   : > { %v670_v25 = vpop.xlane.xlu1 %669 }
 0x37a   : > { %1642 = vrcp.f32 %v670_v25 }
 0x37d   : > { %v728_v29 = vpop.permute.xlu1 %727 }
 0x381   : > { %v726_v30 = vpop.permute.xlu1 %725 }
 0x387   : > { %v1643_v26 = vpop.eup %1642 }
 0x388   : > { %v672_v27 = vmul.f32 %v1643_v26, %v1641_v23  ;;  %v1403_v26 = vld [vmem:[%s479_s11] ss:$0 sm:$0xff] }
 0x38a   : > { %v673_v28 = vpack.c.bf16 %v672_v27, %v672_v27 }
 0x38c   : > { %1479 = vmatmul.mubr.msk.bf16.vlgmr.msra.gmra.mxu1 %vm661_vm5, %v673_v28 }
 0x38d   : > { %1483 = vmatpush3.xpose.msk.msra.mxu1 %vm585_vm3, %v728_v29  ;;  %1484 = vmatprep.mubr.msk.f32.mxu1 %vm1780_vm1, %v1779_v2 }
 0x38e   : > { %1487 = vmatprep.subr.bf16.mxu1 %v1779_v2 }
 0x394   : > { %1485 = vmatmul.mubr.msk.f32.vlgmr.msra.gmra.mxu1 %vm585_vm3, %v726_v30 }
 0x395   : > { %1489 = vmatprep.mubr.msk.bf16.mxu1 %vm1780_vm1, %v1779_v2 }
 0x44c   : > { %v719_v31 = vpop.f32.mrf.mxu1 }
 0x44e   : > { %v1480_v32 = vpop.f32.mrf.mxu1 }
 0x450   : > { %v722_v33 = vpop.f32.mrf.mxu1 }
 0x452   : > { %v1481_v34 = vpop.f32.mrf.mxu1 }
 0x454   : > { %v799_v35 = vpop.f32.mrf.mxu1 }
 0x455   : > { %v803_v36 = vmul.f32 0.17677669, %v799_v35 }
 0x456   : > { %v1486_v37 = vpop.f32.mrf.mxu1 }
 0x457   : > { %v804_v38 = vsel %vm661_vm5, %v803_v36, -inf }
 0x458   : > { %805 = vmax.xlane.f32.xlu1 %v804_v38 }
 0x4e1   : > { %v806_v39 = vpop.xlane.xlu1 %805 }
 0x4e2   : > { %v807_v40 = vsub.f32 %v803_v36, %v806_v39 }
 0x4e4   : > { %v808_v41 = vmul.f32 1.442695, %v807_v40 }
 0x4e6   : > { %1644 = vpow2.f32 %v808_v41 }
 0x4f3   : > { %v1645_v42 = vpop.eup %1644 }
 0x4f4   : > { %v810_v43 = vsel %vm661_vm5, %v1645_v42, 0.0 }
 0x4f5   : > { %811 = vadd.xlane.f32.xlu0 %v810_v43 }
 0x50b   : > { %816 = vrot.lane.b32.xlu0 %v674_v9, %s1782_s2 }
 0x57e   : > { %v812_v44 = vpop.xlane.xlu0 %811 }
 0x57f   : > { %1646 = vrcp.f32 %v812_v44 }
 0x582   : > { %v817_v45 = vpop.permute.xlu0 %816 }
 0x583   : > { %v822_v46 = vsel %vm681_vm4, %v817_v45, 0 }
 0x584   : > { %1488 = vmatpush3.bf16.msra.mxu1 %v822_v46 }
 0x585   : > { %1493 = vmatprep.subr.bf16.mxu1 %v1779_v2 }
 0x58c   : > { %v1647_v47 = vpop.eup %1646 }
 0x58d   : > { %v814_v48 = vmul.f32 %v1647_v47, %v1645_v42 }
 0x58f   : > { %v815_v49 = vpack.c.bf16 %v814_v48, %v814_v48 }
 0x591   : > { %1490 = vmatmul.mubr.msk.bf16.vlgmr.msra.gmra.mxu1 %vm661_vm5, %v815_v49 }
 0x592   : > { %1501 = vmatprep.mubr.msk.bf16.mxu1 %vm1780_vm1, %v1779_v2  ;;  %1494 = vmatpush3.bf16.msra.mxu1 %v1624_v50 }
 0x593   : > { %1495 = vmatprep.subr.bf16.mxu1 %v1779_v2 }
 0x596   : > { %1496 = vmatpush3.bf16.msra.mxu1 %v1625_v51  ;;  %v1417_v51 = vld [vmem:[%s492_s19] ss:$0 sm:$0xff]  ;;  %s1784_s19 = smov [#allocation5]  }
 0x597   : > { %1497 = vmatprep.subr.bf16.mxu1 %v1779_v2 }
 0x59a   : > { %1498 = vmatpush3.bf16.msra.mxu1 %v1626_v52 }
 0x59b   : > { %1499 = vmatprep.subr.bf16.mxu1 %v1779_v2 }
 0x59e   : > { %1500 = vmatpush3.bf16.msra.mxu1 %v1627_v53  ;;  %v1418_v53 = vld [vmem:[%s495_s15] ss:$0 sm:$0xff] }
 0x59f   : > { %1505 = vmatprep.subr.bf16.mxu1 %v1779_v2 }
 0x651   : > { %v858_v54 = vpop.f32.mrf.mxu1 }
 0x652   : > { %865 = vrot.lane.b32.xlu0 %v858_v54, %s1782_s2  ;;  %s1190_s2 = scalar_lea.sflag [#allocation4], %s1934_s22 }
 0x653   : > { %v1491_v55 = vpop.f32.mrf.mxu1 }
 0x655   : > { %v861_v56 = vpop.f32.mrf.mxu1 }
 0x657   : > { %v1492_v57 = vpop.f32.mrf.mxu1 }
 0x6c4   : > { %v866_v58 = vpop.permute.xlu0 %865 }
 0x6c5   : > { %v868_v59 = vsel %vm585_vm3, %v719_v31, %v866_v58 }
 0x6c6   : > { %v869_v60 = vpack.c.bf16 %v868_v59, %v868_v59 }
 0x6c8   : > { %1502 = vmatmul.mubr.msk.bf16.vlgmr.msra.gmra.mxu1 %vm538_vm2, %v869_v60 }
 0x6c9   : > { %1513 = vmatprep.mubr.msk.bf16.mxu1 %vm1780_vm1, %v1779_v2  ;;  %1506 = vmatpush3.bf16.msra.mxu1 %v1628_v10 }
 0x6ca   : > { %1507 = vmatprep.subr.bf16.mxu1 %v1779_v2 }
 0x788   : > { %v939_v61 = vpop.f32.mrf.mxu1 }
 0x789   : > { %v945_v62 = vadd.f32 %v939_v61, %v1995_v6  ;;  %v1629_v6 = vld [vmem:[%s1966_s16 + $0x10] sm:$0xff]   ;;  %s2181_s16 = scalar_lea.vmem %s2142_s3, %s1944_s9  ;;  %s1684_s9 = sshll.u32 %s1784_s19, 4  ;;  %s1685_s9 = int_to_ptr.vmem [resolvable:$false] %s1684_s9 }
 0x78a   : > { %v1503_v63 = vpop.f32.mrf.mxu1  ;;  %1508 = vmatpush3.bf16.msra.mxu1 %v1629_v6  ;;  %v1402_v24 = vld [vmem:[%s2181_s16] ss:$0 sm:$0xff]  ;;  %s1686_s13 = scalar_lea.vmem %s1685_s9, 256  ;;  %p1687_p4 = scmp.lt.s32.totalorder %s1204_s20, %s1685_s9 }
 0x78b   : > { %v946_v0 = vsel %vm538_vm2, %v945_v62, 0.0  ;;  %1509 = vmatprep.subr.bf16.mxu1 %v1779_v2  ;;  %p1688_p5 = scmp.lt.s32.totalorder %s1686_s13, %s1680_s10 }
 0x78c   : > { %947 = vadd.xlane.f32.xlu0 %v946_v0  ;;  %v942_v1 = vpop.f32.mrf.mxu1 }
 0x78d   : > { %p1689_p6 = por %p1688_p5, %p1687_p4 }
 0x78e   : > { %v1504_v3 = vpop.f32.mrf.mxu1  ;;  %1510 = vmatpush3.bf16.msra.mxu1 %v1630_v11 }
 0x78f   : > { %1511 = vmatprep.subr.bf16.mxu1 %v1779_v2  ;;  %v1639_v2 = vld [vmem:[%s1976_s30] sm:$0xff]   ;;  %s2182_s30 = sld [smem:[#allocation21_spill]]  ;;  %p1690_p7 = pnand %p1689_p6, %p1683_p2 }
 0x790   : > { %1532 = vmatpush3.bf16.msra.mxu0 %v1639_v2 }
 0x792   : > { %1512 = vmatpush3.bf16.msra.mxu1 %v1631_v12 }
 0x795   : > { %s2183_s29 = smov %s2182_s30  ;;  %s1201_s1 = scalar_lea.hbm %s2182_s30, %s1420_s23 }
 0x815   : > { %v948_v4 = vpop.xlane.xlu0 %947 }
 0x816   : > { %v950_v5 = vmul.f32 0.015625, %v948_v4 }
 0x818   : > { %v951_v7 = vsub.f32 %v945_v62, %v950_v5 }
 0x81a   : > { %v952_v8 = vmul.f32 %v951_v7, %v951_v7 }
 0x81c   : > { %v953_v9 = vsel %vm538_vm2, %v952_v8, 0.0 }
 0x81d   : > { %954 = vadd.xlane.f32.xlu1 %v953_v9 }
 0x8a6   : > { %v955_v20 = vpop.xlane.xlu1 %954 }
 0x8a7   : > { %v956_v21 = vmul.f32 0.015625, %v955_v20 }
 0x8a9   : > { %v957_v22 = vadd.f32 1e-05, %v956_v21 }
 0x8ab   : > { %1648 = vrsqrt.f32 %v957_v22 }
 0x8b8   : > { %v1649_v23 = vpop.eup %1648 }
 0x8b9   : > { %v959_v25 = vmul.f32 %v1649_v23, %v951_v7 }
 0x8bb   : > { %v967_v27 = vmul.f32 %v1402_v24, %v959_v25 }
 0x8bd   : > { %v975_v28 = vadd.f32 %v1403_v26, %v967_v27 }
 0x8bf   : > { %v976_v29 = vpack.c.bf16 %v975_v28, %v975_v28 }
 0x8c1   : > { %1514 = vmatmul.mubr.msk.bf16.vlgmr.msra.gmra.mxu1 %vm538_vm2, %v976_v29 }
 0x981   : > { %v1046_v30 = vpop.f32.mrf.mxu1 }
 0x982   : > { %v1052_v31 = vmax.f32 %v1046_v30, 0.0 }
 0x983   : > { %v1515_v32 = vpop.f32.mrf.mxu1 }
 0x984   : > { %v1053_v33 = vpack.c.bf16 %v1052_v31, %v1052_v31 }
 0x985   : > { %v1049_v34 = vpop.f32.mrf.mxu1 }
 0x986   : > { %1534 = vmatmul.mubr.bf16.vlgmr.msra.gmra.mxu0 %v1053_v33 }
 0x987   : > { %v1516_v35 = vpop.f32.mrf.mxu1 }
 0xa46   : > { %v1152_v36 = vpop.f32.mrf.mxu0 }
 0xa47   : > { %v1158_v37 = vadd.f32 %v1152_v36, %v975_v28 }
 0xa48   : > { %v1535_v38 = vpop.f32.mrf.mxu0 }
 0xa49   : > { %v1159_v39 = vsel %vm538_vm2, %v1158_v37, 0.0 }
 0xa4a   : > { %1160 = vadd.xlane.f32.xlu1 %v1159_v39  ;;  %v1155_v40 = vpop.f32.mrf.mxu0 }
 0xa4c   : > { %v1536_v41 = vpop.f32.mrf.mxu0 }
 0xad3   : > { %v1161_v42 = vpop.xlane.xlu1 %1160 }
 0xad4   : > { %v1162_v43 = vmul.f32 0.015625, %v1161_v42 }
 0xad6   : > { %v1163_v44 = vsub.f32 %v1158_v37, %v1162_v43 }
 0xad8   : > { %v1164_v45 = vmul.f32 %v1163_v44, %v1163_v44 }
 0xada   : > { %v1165_v46 = vsel %vm538_vm2, %v1164_v45, 0.0 }
 0xadb   : > { %1166 = vadd.xlane.f32.xlu1 %v1165_v46 }
 0xb64   : > { %v1167_v47 = vpop.xlane.xlu1 %1166 }
 0xb65   : > { %v1168_v48 = vmul.f32 0.015625, %v1167_v47 }
 0xb67   : > { %v1169_v49 = vadd.f32 1e-05, %v1168_v48 }
 0xb69   : > { %1650 = vrsqrt.f32 %v1169_v49 }
 0xb76   : > { %v1651_v50 = vpop.eup %1650 }
 0xb77   : > { %v1171_v52 = vmul.f32 %v1651_v50, %v1163_v44 }
 0xb79   : > { %v1179_v54 = vmul.f32 %v1417_v51, %v1171_v52 }
 0xb7b   : > { %v1187_v55 = vadd.f32 %v1418_v53, %v1179_v54 }
 0xb7d   : > { %1188 = vst.msk [vmem:[%s1982_s28] sm:$0xff] %vm538_vm2, %v1187_v55 }
 0xb7e   : > { %1693 = shalt.err (!%p1690_p7)
}
 0xb7f   : > { %s1694_s15 = scalar_lea.hbm %s1201_s1, 128  ;;  %s1698_s0 = scalar_lea.hbm %s2183_s29, 256 }
 0xb80   : > { %p1695_p8 = scmp.ne.s32.totalorder %s1201_s1, %s1694_s15  ;;  %p1699_p13 = scmp.lt.s32.totalorder %s1201_s1, %s2183_s29 }
 0xb81   : > { %p1700_p0 = scmp.lt.s32.totalorder %s1698_s0, %s1694_s15 }
 0xb82   : > { %p1696_p12 = pnand %p1695_p8, %p1898_p10 }
 0xb83   : > { %p1701_p9 = por %p1700_p0, %p1699_p13 }
 0xb84   : > { %p1697_p3 = pneg %p1696_p12 }
 0xb86   : > { %p1702_p11 = pnand %p1701_p9, %p1697_p3 }
 0xb88   : > { %1705 = shalt.err (!%p1702_p11)
}
 0xb89   : > { %1539 = dma.vmem_to_hbm [thread:$0]  (%p1898_p10), %s1204_s20, 128, %s1201_s1, %s1190_s2  }
 0xb8a PF: > { %s2184_s26 = sld [smem:[#allocation13_spill]] }
 0xb8b   : > { %s2185_s27 = sld [smem:[#allocation8_spill]] }
 0xb8c   : > { %s2186_s11 = sld [smem:[#allocation16_spill]] }
 0xb90   : > { %p1550_p1 = scmp.ge.s32.totalorder %s2184_s26, 2 }
 0xb91   : > { %s1215_s18 = sand.u32 1, %s2185_s27  }
 0xb92   : > { %p2187_p2 = scmp.ne.s32.totalorder %s2186_s11, 0  ;;  %s1216_s14 = scalar_lea.sflag [#allocation4], %s1215_s18 }
 0xb94   : > { %p1546_p4 = pnand %p1550_p1, %p2187_p2 }
 0xb96   : > { %p1547_p5 = pneg %p1546_p4 }
 0xb98   : > { %1743 = dma.done.wait (%p1547_p5), %s1216_s14, 128  }
 0xb99   : > { %1745 = vsyncadd (%p1547_p5), %s1216_s14, 4294967168  ;;  %s25_s16 = sadd.s32 1, %s2184_s26   ;;  %s2188_s30 = sld [smem:[#allocation9_spill]] }
 0xb9a   : > { %p22_p6 = scmp.ge.s32.totalorder %s25_s16, 6   ;;  %s2189_s10 = sld [smem:[#allocation10_spill]] }
 0xb9b   : > { %s2190_s11 = sld [smem:[#allocation17_spill]] }
 0xb9c   : > { %s2191_s12 = sld [smem:[#allocation11_spill]]  ;;  %24 = sbr.rel (!%p22_p6) target bundleno = 12 (0xc), region = 129 }
 0xb9d   : > { %s2192_s13 = sld [smem:[#allocation12_spill]] }
 0xb9e   : > { %s2193_s14 = sld [smem:[#allocation14_spill]] }
 0xb9f   : > { %s2194_s15 = sld [smem:[#allocation15_spill]] }
 0xba1   :  { %1221 = vsyncpa [#allocation3], 1 }
 0xba2   :  { %1223 = vsyncpa [#allocation3 + $0x1], 1 }
 0xba3   :  { %1224 = vsyncpa [#allocation4], 1 }
 0xba4   :  { %1226 = vsyncpa [#allocation4 + $0x1], 1 }

</bundles_post_ra>
